<compile_context>
chip_gen: v7x
topology: tpu7x:2x2x1
jax: 0.10.0
libtpu: 0.0.40
codegen_flags: <defaults>
</compile_context>

<pallas_src>
from functools import partial

import jax
import jax.numpy as jnp
from jax import lax
from jax.experimental import pallas as pl
from jax.experimental.pallas import tpu as pltpu

GAMMA = 0.1
NEG_BIG = -9.0e15


def _round_up(x, m):
    return ((x + m - 1) // m) * m


def attention_nodelevel_kernel(h_ref, g_ref, adj_ref, a1_ref, e2_ref, out_ref,
                               e1_s, m_s, l_s, rs_s, accp_s, accadj_s,
                               *, gamma, approx_recip, m_total, tm, mask_cols):
    k = pl.program_id(1)

    @pl.when(k == 0)
    def _init():
        # e1 depends only on the h row tile: VPU broadcast-mul + XLU lane
        # reduce (no width-1 MXU matvec); computed once per N tile.
        e1_s[...] = jnp.sum(h_ref[...] * a1_ref[...], axis=-1, keepdims=True)
        m_s[...] = jnp.full_like(m_s, -jnp.inf)
        l_s[...] = jnp.zeros_like(l_s)
        rs_s[...] = jnp.zeros_like(rs_s)
        accp_s[...] = jnp.zeros_like(accp_s)
        accadj_s[...] = jnp.zeros_like(accadj_s)

    # adj streamed narrow (bf16 in fast mode); all math in f32.
    adj = adj_ref[...].astype(jnp.float32)                       # (TN, TM)
    if mask_cols:
        # adj is NOT padded in HBM: zero the out-of-range columns of the
        # trailing partial M tile (cheap VPU compare+select).
        col = lax.broadcasted_iota(jnp.int32, (1, tm), 1) + k * tm
        adj = jnp.where(col < m_total, adj, 0.0)

    e = e1_s[...] + e2_ref[...]                                  # (TN, TM)
    e = jnp.where(e >= 0.0, e, 0.2 * e)                          # LeakyReLU(0.2)
    masked = jnp.where(adj > 0.0, e, NEG_BIG)

    # Online softmax over the tiled M axis.
    m_prev = m_s[...]
    m_new = jnp.maximum(m_prev, jnp.max(masked, axis=1, keepdims=True))
    alpha = jnp.exp(m_prev - m_new)                              # (TN, 1)
    p = jnp.exp(masked - m_new)                                  # (TN, TM)

    l_s[...] = alpha * l_s[...] + jnp.sum(p, axis=1, keepdims=True)
    rs_s[...] = rs_s[...] + jnp.sum(adj, axis=1, keepdims=True)
    m_s[...] = m_new

    # Two accumulators: softmax part (rescaled online) and the gamma-blend adj
    # part; both MXU matmuls in bf16 with f32 accumulation in fast mode.
    g_blk = g_ref[...]                                           # (TM, D)
    accp_s[...] = alpha * accp_s[...] + jnp.dot(
        p.astype(g_blk.dtype), g_blk, preferred_element_type=jnp.float32)
    accadj_s[...] = accadj_s[...] + jnp.dot(
        adj.astype(g_blk.dtype), g_blk, preferred_element_type=jnp.float32)

    @pl.when(k == pl.num_programs(1) - 1)
    def _finalize():
        # Fused epilogue; isolated rows: row_sum = 0 -> scale = 0 -> softmax
        # part contributes 0, adj part is 0 -> output 0 (matches reference).
        inv_l = pl.reciprocal(l_s[...], approx=approx_recip)     # EUP in fast mode
        scale = (gamma * rs_s[...]) * inv_l                      # (TN, 1)
        out_ref[...] = (accp_s[...] * scale
                        + (1.0 - gamma) * accadj_s[...]).astype(out_ref.dtype)


def _choose_tiles(N, M, D, tn_req, tm_req, adj_bytes, g_bytes, budget_bytes):
    """Pick (tn, tm) so the estimated per-step VMEM footprint fits the budget."""
    tn = max(8, min(_round_up(tn_req, 8), _round_up(N, 8)))
    # Give the "parallel" N axis >= 2 steps when N is big enough so a two-TC
    # part (v7x megacore) actually shards it; harmless on single-TC chips.
    if N >= 32 and pl.cdiv(N, tn) < 2:
        tn = _round_up(pl.cdiv(N, 2), 8)

    tm = M if tm_req >= M else max(128, (tm_req // 128) * 128)
    if tm >= M:
        tm = M

    def footprint(tn_, tm_):
        adj_t = 2 * tn_ * tm_ * adj_bytes        # double-buffered adj tile
        temps = 3 * tn_ * tm_ * 4                # e / masked / p f32 temporaries
        g_t = 2 * tm_ * D * g_bytes              # double-buffered g tile
        io_t = 2 * tn_ * D * 4 * 2               # h + out tiles
        acc = 2 * tn_ * D * 4                    # accp + accadj scratch
        vecs = 4 * tn_ * 128 * 4 + 2 * 8 * tm_ * 4 + 2 * 8 * D * 4
        return adj_t + temps + g_t + io_t + acc + vecs

    while footprint(tn, tm) > budget_bytes and tm > 128:
        tm = max(128, ((tm // 2) // 128) * 128)
    while footprint(tn, tm) > budget_bytes and tn > 8:
        tn = max(8, _round_up(tn // 2, 8))
    return tn, tm


def attention_nodelevel(h, g, adj, a1, a2, *, gamma=GAMMA, tn=512, tm=2048,
                        fast_math=True, vmem_budget_bytes=40 * 1024 * 1024,
                        vmem_limit_bytes=48 * 1024 * 1024):
    """Forward of Attention_NodeLevel (dense adjacency)."""
    N, D = h.shape
    M, Dg = g.shape
    assert Dg == D and adj.shape == (N, M)
    assert a1.shape == (D, 1) and a2.shape == (D, 1)

    h = h.astype(jnp.float32)
    a1_row = a1.astype(jnp.float32).reshape(1, D)
    g_f32 = g.astype(jnp.float32)

    mm_dtype = jnp.bfloat16 if fast_math else jnp.float32
    # adj stream dtype: bf16 in fast mode (exact for 0/1 adjacency). If the
    # caller already stores adj narrow, it is streamed as-is (no cast pass).
    if fast_math:
        if adj.dtype in (jnp.dtype(jnp.bfloat16), jnp.dtype(jnp.float16)):
            adj_in = adj
        else:
            adj_in = adj.astype(jnp.bfloat16)
    else:
        adj_in = adj.astype(jnp.float32)

    tn, tm = _choose_tiles(N, M, D, tn, tm,
                           adj_bytes=adj_in.dtype.itemsize,
                           g_bytes=jnp.dtype(mm_dtype).itemsize,
                           budget_bytes=vmem_budget_bytes)

    nk = pl.cdiv(M, tm)
    m_pad = nk * tm
    mask_cols = (m_pad != M)
    # Pad only the small M-length arrays (g, e2). adj — the big one — is NOT
    # padded: OOB rows are discarded, OOB columns are masked in-kernel.
    if m_pad != M:
        g_f32 = jnp.pad(g_f32, ((0, m_pad - M), (0, 0)))

    # e2 = g @ a2 depends only on (g, a2): hoisted out of the kernel.
    e2_row = jnp.sum(g_f32 * a2.astype(jnp.float32).reshape(1, D),
                     axis=-1).reshape(1, m_pad)
    g_mm = g_f32.astype(mm_dtype)

    grid = (pl.cdiv(N, tn), nk)
    kernel = partial(attention_nodelevel_kernel, gamma=float(gamma),
                     approx_recip=fast_math, m_total=M, tm=tm,
                     mask_cols=mask_cols)

    cost = pl.CostEstimate(
        flops=4 * N * M * D + 10 * N * M,
        transcendentals=N * M,
        bytes_accessed=(N * M * adj_in.dtype.itemsize + 2 * N * D * 4
                        + m_pad * D * jnp.dtype(mm_dtype).itemsize
                        + m_pad * 4 + D * 8),
    )

    out = pl.pallas_call(
        kernel,
        out_shape=jax.ShapeDtypeStruct((N, D), jnp.float32),
        grid=grid,
        in_specs=[
            pl.BlockSpec((tn, D), lambda i, k: (i, 0)),    # h row tile
            pl.BlockSpec((tm, D), lambda i, k: (k, 0)),    # g column tile
            pl.BlockSpec((tn, tm), lambda i, k: (i, k)),   # adj tile (narrow dtype)
            pl.BlockSpec((1, D), lambda i, k: (0, 0)),     # a1 (grid-invariant)
            pl.BlockSpec((1, tm), lambda i, k: (0, k)),    # e2 tile
        ],
        out_specs=pl.BlockSpec((tn, D), lambda i, k: (i, 0)),
        scratch_shapes=[
            pltpu.VMEM((tn, 1), jnp.float32),   # e1 = h @ a1
            pltpu.VMEM((tn, 1), jnp.float32),   # running max
            pltpu.VMEM((tn, 1), jnp.float32),   # running softmax denominator
            pltpu.VMEM((tn, 1), jnp.float32),   # running row_sum(adj)
            pltpu.VMEM((tn, D), jnp.float32),   # accumulator: p @ g
            pltpu.VMEM((tn, D), jnp.float32),   # accumulator: adj @ g
        ],
        compiler_params=pltpu.CompilerParams(
            dimension_semantics=("parallel", "arbitrary"),
            vmem_limit_bytes=vmem_limit_bytes,
        ),
        cost_estimate=cost,
    )(h, g_mm, adj_in, a1_row, e2_row)

    return out


def reference(h, g, adj, a1, a2, gamma=GAMMA):
    e = (h @ a1) + (g @ a2).T
    e = jnp.where(e >= 0.0, e, 0.2 * e)
    masked = jnp.where(adj > 0.0, e, jnp.full_like(e, NEG_BIG))
    att = jax.nn.softmax(masked, axis=1)
    att = att * jnp.sum(adj, axis=1, keepdims=True)
    att = att * gamma + adj * (1.0 - gamma)
    return att @ g


if __name__ == "__main__":
    key = jax.random.PRNGKey(0)
    k_h, k_g, k_adj, k_a1, k_a2, k_h2, k_g2, k_adj2 = jax.random.split(key, 8)

    # Small shapes consistent with Attention_NodeLevel inside HGAT.
    N, M, D = 16, 8, 32
    h = jax.random.normal(k_h, (N, D), dtype=jnp.float32)
    g = jax.random.normal(k_g, (M, D), dtype=jnp.float32)
    adj = (jax.random.uniform(k_adj, (N, M)) > 0.5).astype(jnp.float32)

    # xavier_normal_ with gain=1.414 on shape (D, 1): std = gain*sqrt(2/(D+1))
    std = 1.414 * (2.0 / (D + 1)) ** 0.5
    a1 = std * jax.random.normal(k_a1, (D, 1), dtype=jnp.float32)
    a2 = std * jax.random.normal(k_a2, (D, 1), dtype=jnp.float32)

    ref = reference(h, g, adj, a1, a2)

    # 1) Exact path (f32 adj/matmul, exact reciprocal): tight numerical check.
    out_exact = attention_nodelevel(h, g, adj, a1, a2, fast_math=False)
    jax.block_until_ready(out_exact)
    assert jnp.allclose(out_exact, ref, atol=1e-4, rtol=1e-4), "exact path mismatch"

    # 2) Fast path (bf16 adj stream, bf16 MXU matmuls, approx EUP reciprocal).
    out_fast = attention_nodelevel(h, g, adj, a1, a2, fast_math=True)
    jax.block_until_ready(out_fast)
    assert jnp.allclose(out_fast, ref, atol=1e-1, rtol=5e-2), "fast path mismatch"

    # 3) Multi-tile grid: partial trailing blocks on both N and M, online
    #    softmax across two M tiles, in-kernel masking of unpadded adj columns.
    N2, M2 = 40, 200
    h2 = jax.random.normal(k_h2, (N2, D), dtype=jnp.float32)
    g2 = jax.random.normal(k_g2, (M2, D), dtype=jnp.float32)
    adj2 = (jax.random.uniform(k_adj2, (N2, M2)) > 0.6).astype(jnp.float32)
    ref2 = reference(h2, g2, adj2, a1, a2)

    out2_exact = attention_nodelevel(h2, g2, adj2, a1, a2, tn=16, tm=128,
                                     fast_math=False)
    jax.block_until_ready(out2_exact)
    assert jnp.allclose(out2_exact, ref2, atol=2e-3, rtol=1e-3), "tiled exact mismatch"

    out2_fast = attention_nodelevel(h2, g2, adj2, a1, a2, tn=16, tm=128,
                                    fast_math=True)
    jax.block_until_ready(out2_fast)
    assert jnp.allclose(out2_fast, ref2, atol=3e-1, rtol=1e-1), "tiled fast mismatch"

    print("KERNEL_OK")
</pallas_src>

<mosaic_0001>
module attributes {stable_mosaic.version = 11 : i64} {
  func.func @attention_nodelevel_kernel(%arg0: i32, %arg1: i32, %arg2: memref<16x32xf32, #tpu.memory_space<vmem>>, %arg3: memref<8x32xf32, #tpu.memory_space<vmem>>, %arg4: memref<16x8xf32, #tpu.memory_space<vmem>>, %arg5: memref<1x32xf32, #tpu.memory_space<vmem>>, %arg6: memref<1x8xf32, #tpu.memory_space<vmem>>, %arg7: memref<16x32xf32, #tpu.memory_space<vmem>>, %arg8: memref<16x1xf32, #tpu.memory_space<vmem>>, %arg9: memref<16x1xf32, #tpu.memory_space<vmem>>, %arg10: memref<16x1xf32, #tpu.memory_space<vmem>>, %arg11: memref<16x1xf32, #tpu.memory_space<vmem>>, %arg12: memref<16x32xf32, #tpu.memory_space<vmem>>, %arg13: memref<16x32xf32, #tpu.memory_space<vmem>>) attributes {dimension_semantics = [#tpu.dimension_semantics<parallel>, #tpu.dimension_semantics<arbitrary>], iteration_bounds = array<i64: 1, 1>, scalar_prefetch = 0 : i64, scratch_operands = 6 : i64, tpu.core_type = #tpu.core_type<tc>, window_params = [{transform_indices = @transform_0, window_bounds = array<i64: 16, 32>}, {transform_indices = @transform_1, window_bounds = array<i64: 8, 32>}, {transform_indices = @transform_2, window_bounds = array<i64: 16, 8>}, {pipeline_mode = #tpu.pipeline_mode<synchronous>, transform_indices = @transform_3, window_bounds = array<i64: 1, 32>}, {transform_indices = @transform_4, window_bounds = array<i64: 1, 8>}, {transform_indices = @transform_5, window_bounds = array<i64: 16, 32>}]} {
    %c0_i32 = arith.constant 0 : i32
    %0 = arith.cmpi eq, %arg1, %c0_i32 : i32
    %1 = arith.extui %0 : i1 to i32
    %c0_i32_0 = arith.constant 0 : i32
    %2 = arith.cmpi ne, %1, %c0_i32_0 : i32
    scf.if %2 {
      %c0_38 = arith.constant 0 : index
      %c0_39 = arith.constant 0 : index
      %53 = vector.load %arg2[%c0_38, %c0_39] : memref<16x32xf32, #tpu.memory_space<vmem>>, vector<16x32xf32>
      %c0_40 = arith.constant 0 : index
      %c0_41 = arith.constant 0 : index
      %54 = vector.load %arg5[%c0_40, %c0_41] : memref<1x32xf32, #tpu.memory_space<vmem>>, vector<1x32xf32>
      %55 = vector.broadcast %54 : vector<1x32xf32> to vector<16x32xf32>
      %56 = arith.mulf %53, %55 : vector<16x32xf32>
      %cst_42 = arith.constant dense<0.000000e+00> : vector<16xf32>
      %57 = vector.multi_reduction <add>, %56, %cst_42 [1] : vector<16x32xf32> to vector<16xf32>
      %58 = vector.shape_cast %57 : vector<16xf32> to vector<16x1xf32>
      %c0_43 = arith.constant 0 : index
      %c0_44 = arith.constant 0 : index
      %59 = vector.load %arg8[%c0_43, %c0_44] : memref<16x1xf32, #tpu.memory_space<vmem>>, vector<16x1xf32>
      tpu.vector_store %arg8[%c0_43, %c0_44], %58 {strides = array<i32>} : memref<16x1xf32, #tpu.memory_space<vmem>>, vector<16x1xf32>,
      %cst_45 = arith.constant 0xFF800000 : f32
      %60 = vector.broadcast %cst_45 : f32 to vector<16x1xf32>
      %c0_46 = arith.constant 0 : index
      %c0_47 = arith.constant 0 : index
      %61 = vector.load %arg9[%c0_46, %c0_47] : memref<16x1xf32, #tpu.memory_space<vmem>>, vector<16x1xf32>
      tpu.vector_store %arg9[%c0_46, %c0_47], %60 {strides = array<i32>} : memref<16x1xf32, #tpu.memory_space<vmem>>, vector<16x1xf32>,
      %cst_48 = arith.constant 0.000000e+00 : f32
      %62 = vector.broadcast %cst_48 : f32 to vector<16x1xf32>
      %c0_49 = arith.constant 0 : index
      %c0_50 = arith.constant 0 : index
      %63 = vector.load %arg10[%c0_49, %c0_50] : memref<16x1xf32, #tpu.memory_space<vmem>>, vector<16x1xf32>
      tpu.vector_store %arg10[%c0_49, %c0_50], %62 {strides = array<i32>} : memref<16x1xf32, #tpu.memory_space<vmem>>, vector<16x1xf32>,
      %cst_51 = arith.constant 0.000000e+00 : f32
      %64 = vector.broadcast %cst_51 : f32 to vector<16x1xf32>
      %c0_52 = arith.constant 0 : index
      %c0_53 = arith.constant 0 : index
      %65 = vector.load %arg11[%c0_52, %c0_53] : memref<16x1xf32, #tpu.memory_space<vmem>>, vector<16x1xf32>
      tpu.vector_store %arg11[%c0_52, %c0_53], %64 {strides = array<i32>} : memref<16x1xf32, #tpu.memory_space<vmem>>, vector<16x1xf32>,
      %cst_54 = arith.constant 0.000000e+00 : f32
      %66 = vector.broadcast %cst_54 : f32 to vector<16x32xf32>
      %c0_55 = arith.constant 0 : index
      %c0_56 = arith.constant 0 : index
      %67 = vector.load %arg12[%c0_55, %c0_56] : memref<16x32xf32, #tpu.memory_space<vmem>>, vector<16x32xf32>
      tpu.vector_store %arg12[%c0_55, %c0_56], %66 {strides = array<i32>} : memref<16x32xf32, #tpu.memory_space<vmem>>, vector<16x32xf32>,
      %cst_57 = arith.constant 0.000000e+00 : f32
      %68 = vector.broadcast %cst_57 : f32 to vector<16x32xf32>
      %c0_58 = arith.constant 0 : index
      %c0_59 = arith.constant 0 : index
      %69 = vector.load %arg13[%c0_58, %c0_59] : memref<16x32xf32, #tpu.memory_space<vmem>>, vector<16x32xf32>
      tpu.vector_store %arg13[%c0_58, %c0_59], %68 {strides = array<i32>} : memref<16x32xf32, #tpu.memory_space<vmem>>, vector<16x32xf32>,
    } else {
    }
    %c0 = arith.constant 0 : index
    %c0_1 = arith.constant 0 : index
    %3 = vector.load %arg4[%c0, %c0_1] : memref<16x8xf32, #tpu.memory_space<vmem>>, vector<16x8xf32>
    %c0_2 = arith.constant 0 : index
    %c0_3 = arith.constant 0 : index
    %4 = vector.load %arg8[%c0_2, %c0_3] : memref<16x1xf32, #tpu.memory_space<vmem>>, vector<16x1xf32>
    %c0_4 = arith.constant 0 : index
    %c0_5 = arith.constant 0 : index
    %5 = vector.load %arg6[%c0_4, %c0_5] : memref<1x8xf32, #tpu.memory_space<vmem>>, vector<1x8xf32>
    %6 = vector.broadcast %4 : vector<16x1xf32> to vector<16x8xf32>
    %7 = vector.broadcast %5 : vector<1x8xf32> to vector<16x8xf32>
    %8 = arith.addf %6, %7 : vector<16x8xf32>
    %cst = arith.constant 0.000000e+00 : f32
    %9 = vector.broadcast %cst : f32 to vector<16x8xf32>
    %10 = arith.cmpf oge, %8, %9 : vector<16x8xf32>
    %cst_6 = arith.constant 2.000000e-01 : f32
    %11 = vector.broadcast %cst_6 : f32 to vector<16x8xf32>
    %12 = arith.mulf %11, %8 : vector<16x8xf32>
    %13 = arith.select %10, %8, %12 : vector<16x8xi1>, vector<16x8xf32>
    %cst_7 = arith.constant 0.000000e+00 : f32
    %14 = vector.broadcast %cst_7 : f32 to vector<16x8xf32>
    %15 = arith.cmpf ogt, %3, %14 : vector<16x8xf32>
    %cst_8 = arith.constant -9.000000e+15 : f32
    %16 = vector.broadcast %cst_8 : f32 to vector<16x8xf32>
    %17 = arith.select %15, %13, %16 : vector<16x8xi1>, vector<16x8xf32>
    %c0_9 = arith.constant 0 : index
    %c0_10 = arith.constant 0 : index
    %18 = vector.load %arg9[%c0_9, %c0_10] : memref<16x1xf32, #tpu.memory_space<vmem>>, vector<16x1xf32>
    %cst_11 = arith.constant dense<0xFF800000> : vector<16xf32>
    %19 = vector.multi_reduction <maximumf>, %17, %cst_11 [1] : vector<16x8xf32> to vector<16xf32>
    %20 = vector.shape_cast %19 : vector<16xf32> to vector<16x1xf32>
    %21 = arith.maximumf %18, %20 : vector<16x1xf32>
    %22 = arith.subf %18, %21 : vector<16x1xf32>
    %23 = math.exp %22 : vector<16x1xf32>
    %24 = vector.broadcast %21 : vector<16x1xf32> to vector<16x8xf32>
    %25 = arith.subf %17, %24 : vector<16x8xf32>
    %26 = math.exp %25 : vector<16x8xf32>
    %c0_12 = arith.constant 0 : index
    %c0_13 = arith.constant 0 : index
    %27 = vector.load %arg10[%c0_12, %c0_13] : memref<16x1xf32, #tpu.memory_space<vmem>>, vector<16x1xf32>
    %28 = arith.mulf %23, %27 : vector<16x1xf32>
    %cst_14 = arith.constant dense<0.000000e+00> : vector<16xf32>
    %29 = vector.multi_reduction <add>, %26, %cst_14 [1] : vector<16x8xf32> to vector<16xf32>
    %30 = vector.shape_cast %29 : vector<16xf32> to vector<16x1xf32>
    %31 = arith.addf %28, %30 : vector<16x1xf32>
    %c0_15 = arith.constant 0 : index
    %c0_16 = arith.constant 0 : index
    %32 = vector.load %arg10[%c0_15, %c0_16] : memref<16x1xf32, #tpu.memory_space<vmem>>, vector<16x1xf32>
    tpu.vector_store %arg10[%c0_15, %c0_16], %31 {strides = array<i32>} : memref<16x1xf32, #tpu.memory_space<vmem>>, vector<16x1xf32>,
    %c0_17 = arith.constant 0 : index
    %c0_18 = arith.constant 0 : index
    %33 = vector.load %arg11[%c0_17, %c0_18] : memref<16x1xf32, #tpu.memory_space<vmem>>, vector<16x1xf32>
    %cst_19 = arith.constant dense<0.000000e+00> : vector<16xf32>
    %34 = vector.multi_reduction <add>, %3, %cst_19 [1] : vector<16x8xf32> to vector<16xf32>
    %35 = vector.shape_cast %34 : vector<16xf32> to vector<16x1xf32>
    %36 = arith.addf %33, %35 : vector<16x1xf32>
    %c0_20 = arith.constant 0 : index
    %c0_21 = arith.constant 0 : index
    %37 = vector.load %arg11[%c0_20, %c0_21] : memref<16x1xf32, #tpu.memory_space<vmem>>, vector<16x1xf32>
    tpu.vector_store %arg11[%c0_20, %c0_21], %36 {strides = array<i32>} : memref<16x1xf32, #tpu.memory_space<vmem>>, vector<16x1xf32>,
    %c0_22 = arith.constant 0 : index
    %c0_23 = arith.constant 0 : index
    %38 = vector.load %arg9[%c0_22, %c0_23] : memref<16x1xf32, #tpu.memory_space<vmem>>, vector<16x1xf32>
    tpu.vector_store %arg9[%c0_22, %c0_23], %21 {strides = array<i32>} : memref<16x1xf32, #tpu.memory_space<vmem>>, vector<16x1xf32>,
    %c0_24 = arith.constant 0 : index
    %c0_25 = arith.constant 0 : index
    %39 = vector.load %arg3[%c0_24, %c0_25] : memref<8x32xf32, #tpu.memory_space<vmem>>, vector<8x32xf32>
    %c0_26 = arith.constant 0 : index
    %c0_27 = arith.constant 0 : index
    %40 = vector.load %arg12[%c0_26, %c0_27] : memref<16x32xf32, #tpu.memory_space<vmem>>, vector<16x32xf32>
    %41 = vector.broadcast %23 : vector<16x1xf32> to vector<16x32xf32>
    %42 = arith.mulf %41, %40 : vector<16x32xf32>
    %cst_28 = arith.constant dense<0.000000e+00> : vector<16x32xf32>
    %43 = tpu.matmul %26, %39, %cst_28 {dimension_numbers = #tpu.dot_dimension_numbers<[1], [0], [0], [1], [0, 0, 1, 1], [], []>} : vector<16x8xf32>, vector<8x32xf32>, vector<16x32xf32> -> vector<16x32xf32>
    %44 = arith.addf %42, %43 : vector<16x32xf32>
    %c0_29 = arith.constant 0 : index
    %c0_30 = arith.constant 0 : index
    %45 = vector.load %arg12[%c0_29, %c0_30] : memref<16x32xf32, #tpu.memory_space<vmem>>, vector<16x32xf32>
    tpu.vector_store %arg12[%c0_29, %c0_30], %44 {strides = array<i32>} : memref<16x32xf32, #tpu.memory_space<vmem>>, vector<16x32xf32>,
    %c0_31 = arith.constant 0 : index
    %c0_32 = arith.constant 0 : index
    %46 = vector.load %arg13[%c0_31, %c0_32] : memref<16x32xf32, #tpu.memory_space<vmem>>, vector<16x32xf32>
    %cst_33 = arith.constant dense<0.000000e+00> : vector<16x32xf32>
    %47 = tpu.matmul %3, %39, %cst_33 {dimension_numbers = #tpu.dot_dimension_numbers<[1], [0], [0], [1], [0, 0, 1, 1], [], []>} : vector<16x8xf32>, vector<8x32xf32>, vector<16x32xf32> -> vector<16x32xf32>
    %48 = arith.addf %46, %47 : vector<16x32xf32>
    %c0_34 = arith.constant 0 : index
    %c0_35 = arith.constant 0 : index
    %49 = vector.load %arg13[%c0_34, %c0_35] : memref<16x32xf32, #tpu.memory_space<vmem>>, vector<16x32xf32>
    tpu.vector_store %arg13[%c0_34, %c0_35], %48 {strides = array<i32>} : memref<16x32xf32, #tpu.memory_space<vmem>>, vector<16x32xf32>,
    %c0_i32_36 = arith.constant 0 : i32
    %50 = arith.cmpi eq, %arg1, %c0_i32_36 : i32
    %51 = arith.extui %50 : i1 to i32
    %c0_i32_37 = arith.constant 0 : i32
    %52 = arith.cmpi ne, %51, %c0_i32_37 : i32
    scf.if %52 {
      %c0_38 = arith.constant 0 : index
      %c0_39 = arith.constant 0 : index
      %53 = vector.load %arg10[%c0_38, %c0_39] : memref<16x1xf32, #tpu.memory_space<vmem>>, vector<16x1xf32>
      %54 = tpu.reciprocal %53 : vector<16x1xf32> -> vector<16x1xf32>
      %c0_40 = arith.constant 0 : index
      %c0_41 = arith.constant 0 : index
      %55 = vector.load %arg11[%c0_40, %c0_41] : memref<16x1xf32, #tpu.memory_space<vmem>>, vector<16x1xf32>
      %cst_42 = arith.constant 1.000000e-01 : f32
      %56 = vector.broadcast %cst_42 : f32 to vector<16x1xf32>
      %57 = arith.mulf %56, %55 : vector<16x1xf32>
      %58 = arith.mulf %57, %54 : vector<16x1xf32>
      %c0_43 = arith.constant 0 : index
      %c0_44 = arith.constant 0 : index
      %59 = vector.load %arg12[%c0_43, %c0_44] : memref<16x32xf32, #tpu.memory_space<vmem>>, vector<16x32xf32>
      %60 = vector.broadcast %58 : vector<16x1xf32> to vector<16x32xf32>
      %61 = arith.mulf %59, %60 : vector<16x32xf32>
      %c0_45 = arith.constant 0 : index
      %c0_46 = arith.constant 0 : index
      %62 = vector.load %arg13[%c0_45, %c0_46] : memref<16x32xf32, #tpu.memory_space<vmem>>, vector<16x32xf32>
      %cst_47 = arith.constant 0.899999976 : f32
      %63 = vector.broadcast %cst_47 : f32 to vector<16x32xf32>
      %64 = arith.mulf %63, %62 : vector<16x32xf32>
      %65 = arith.addf %61, %64 : vector<16x32xf32>
      %c0_48 = arith.constant 0 : index
      %c0_49 = arith.constant 0 : index
      %66 = vector.load %arg7[%c0_48, %c0_49] : memref<16x32xf32, #tpu.memory_space<vmem>>, vector<16x32xf32>
      tpu.vector_store %arg7[%c0_48, %c0_49], %65 {strides = array<i32>} : memref<16x32xf32, #tpu.memory_space<vmem>>, vector<16x32xf32>,
    } else {
    }
    return
  }
  func.func @transform_0(%arg0: i32, %arg1: i32) -> (i32, i32) {
    %c0_i32 = arith.constant 0 : i32
    %c0_i32_0 = arith.constant 0 : i32
    return %arg0, %c0_i32 : i32, i32
  }
  func.func @transform_1(%arg0: i32, %arg1: i32) -> (i32, i32) {
    %c0_i32 = arith.constant 0 : i32
    %c0_i32_0 = arith.constant 0 : i32
    return %arg1, %c0_i32 : i32, i32
  }
  func.func @transform_2(%arg0: i32, %arg1: i32) -> (i32, i32) {
    %c0_i32 = arith.constant 0 : i32
    return %arg0, %arg1 : i32, i32
  }
  func.func @transform_3(%arg0: i32, %arg1: i32) -> (i32, i32) {
    %c0_i32 = arith.constant 0 : i32
    %c0_i32_0 = arith.constant 0 : i32
    %c0_i32_1 = arith.constant 0 : i32
    return %c0_i32, %c0_i32_0 : i32, i32
  }
  func.func @transform_4(%arg0: i32, %arg1: i32) -> (i32, i32) {
    %c0_i32 = arith.constant 0 : i32
    %c0_i32_0 = arith.constant 0 : i32
    return %c0_i32, %arg1 : i32, i32
  }
  func.func @transform_5(%arg0: i32, %arg1: i32) -> (i32, i32) {
    %c0_i32 = arith.constant 0 : i32
    %c0_i32_0 = arith.constant 0 : i32
    return %arg0, %c0_i32 : i32, i32
  }
}

</mosaic_0001>

<bundles_post_ra>
// kernel: tpu_custom_call.1
= control target key start
LH: loop header
LB: loop body
LE: loop exit
PB: predicated region body
PF: predicated region fallthrough
CT: control target
= control target key end

     0   :  { %vm36_vm0 = vcmask 261120   ;;  %s566_s0 = inlined_call_operand.vmem [shape: f32[16,32], index: 0, kind: input, shape index: {}]   ;;  %s567_s1 = inlined_call_operand.vmem [shape: f32[8,32], index: 1, kind: input, shape index: {}]   ;;  %s568_s2 = inlined_call_operand.vmem [shape: f32[16,8], index: 2, kind: input, shape index: {}]   ;;  %s569_s3 = inlined_call_operand.vmem [shape: f32[1,32], index: 3, kind: input, shape index: {}]   ;;  %s570_s4 = inlined_call_operand.vmem [shape: f32[1,8], index: 4, kind: input, shape index: {}]   ;;  %s571_s5 = inlined_call_operand.hbm [shape: f32[16,32], index: 5, kind: output, shape index: {}]  }
   0x1   :  { %v25_v0 = vld [vmem:[%s566_s0] sm:$0xff]  ;;  %v26_v2 = vld [vmem:[%s566_s0 + $0x8] sm:$0xff] }
   0x2   :  { %v390_v1 = vld [vmem:[%s569_s3] ss:$0 sm:$0xff] }
   0x3   :  { %v34_v3 = vmul.f32 %v390_v1, %v25_v0  ;;  %v35_v4 = vmul.f32 %v390_v1, %v26_v2 }
   0x4   :  { %10 = vsyncpa [#allocation9], 0  ;;  %v456_v7 = vmov 0   ;;  %vm43_vm1 = vcmask 7168   ;;  %v508_v12 = vld [vmem:[%s568_s2] sm:$0xff]  ;;  %vm91_vm2 = vcmask 64512  }
   0x5   :  { %v37_v5 = vsel %vm36_vm0, %v34_v3, 0.0  ;;  %v40_v6 = vsel %vm36_vm0, %v35_v4, 0.0  ;;  %418 = vset.pattern.permute.xlu1 %v456_v7  ;;  %419 = vset.pattern.permute.xlu0 %v456_v7  ;;  %v457_v13 = vmov -inf   ;;  %v391_v14 = vld [vmem:[%s570_s4] ss:$0 sm:$0xff]  ;;  %vm85_vm4 = vcmp.gt.f32.partialorder %v508_v12, 0.0 }
   0x6   :  { %38 = vadd.xlane.f32.xlu0 %v37_v5  ;;  %409 = vmatprep.mubr.msk.f32.mxu1 %vm91_vm2, %v508_v12  ;;  %46 = vst.msk [vmem:[#allocation3] sm:$0xff] %vm43_vm1, %v457_v13  ;;  %47 = vst.msk [vmem:[#allocation3 + $0x8] sm:$0xff] %vm43_vm1, %v457_v13  ;;  %v57_v19 = vld [vmem:[%s568_s2 + $0x8] sm:$0xff]  ;;  %v458_v28 = vmov 0.0   ;;  %v151_v37 = vld [vmem:[%s567_s1] sm:$0xff]  ;;  %v139_v46 = vsel %vm91_vm2, %v508_v12, 0.0 }
   0x7   :  { %vm86_vm6 = vcmp.gt.f32.partialorder %v57_v19, 0.0  ;;  %48 = vst.msk [vmem:[#allocation4] sm:$0xff] %vm43_vm1, %v458_v28  ;;  %49 = vst.msk [vmem:[#allocation4 + $0x8] sm:$0xff] %vm43_vm1, %v458_v28  ;;  %402 = vmatprep.subr.mxu0 %v151_v37  ;;  %407 = vmatprep.subr.mxu1 %v151_v37  ;;  %v142_v49 = vsel %vm91_vm2, %v57_v19, 0.0  ;;  %s459_s1 = smov [#allocation8]  }
   0x8   :  { %50 = vst.msk [vmem:[#allocation5] sm:$0xff] %vm43_vm1, %v458_v28  ;;  %51 = vst.msk [vmem:[#allocation5 + $0x8] sm:$0xff] %vm43_vm1, %v458_v28  ;;  %403 = vmatpush3.msra.mxu0 %v151_v37  ;;  %408 = vmatpush3.msra.mxu1 %v151_v37  ;;  %s379_s28 = sshll.u32 %s459_s1, 4  ;;  %s380_s28 = int_to_ptr.vmem [resolvable:$true] %s379_s28 }
   0x9   :  { %52 = vst.msk [vmem:[#allocation6] sm:$0xff] %vm36_vm0, %v458_v28  ;;  %53 = vst.msk [vmem:[#allocation6 + $0x8] sm:$0xff] %vm36_vm0, %v458_v28  ;;  %410 = vmatmul.mubr.msk.f32.vlgmr.msra.gmra.mrb[0].mxu1 %vm91_vm2, %v57_v19  ;;  %s432_s29 = scalar_lea.vmem %s380_s28, 256  ;;  %p437_p1 = scmp.lt.s32.totalorder %s380_s28, %s380_s28 }
   0xa   :  { %41 = vadd.xlane.f32.xlu0 %v40_v6  ;;  %54 = vst.msk [vmem:[#allocation7] sm:$0xff] %vm36_vm0, %v458_v28  ;;  %55 = vst.msk [vmem:[#allocation7 + $0x8] sm:$0xff] %vm36_vm0, %v458_v28  ;;  %p433_p0 = scmp.ne.s32.totalorder %s380_s28, %s432_s29  ;;  %p438_p2 = scmp.lt.s32.totalorder %s432_s29, %s432_s29 }
   0xc   :  { %p439_p3 = por %p438_p2, %p437_p1 }
   0xd   :  { %v89_v29 = vld [vmem:[#allocation3] sm:$0xff]  ;;  %v90_v32 = vld [vmem:[#allocation3 + $0x8] sm:$0xff] }
   0xe   :  { %v122_v60 = vld [vmem:[#allocation4] sm:$0xff]  ;;  %v123_v63 = vld [vmem:[#allocation4 + $0x8] sm:$0xff]  ;;  %p440_p4 = pnand %p439_p3, %p433_p0 }
   0xf   :  { %v137_v1 = vld [vmem:[#allocation5] sm:$0xff]  ;;  %v138_v7 = vld [vmem:[#allocation5 + $0x8] sm:$0xff] }
  0x11   :  { %v253_v54 = vld [vmem:[#allocation7 + $0x8] sm:$0xff]  ;;  %v252_v56 = vld [vmem:[#allocation7] sm:$0xff] }
  0x93   :  { %v39_v8 = vpop.xlane.xlu0 %38 }
  0x94   :  { %44 = vst.msk [vmem:[#allocation2] sm:$0xff] %vm43_vm1, %v39_v8 }
  0x97   :  { %v42_v9 = vpop.xlane.xlu0 %41 }
  0x98   :  { %45 = vst.msk [vmem:[#allocation2 + $0x8] sm:$0xff] %vm43_vm1, %v42_v9 }
  0x9b   :  { %v58_v10 = vld [vmem:[#allocation2] sm:$0xff] }
  0x9c   :  { %63 = vperm.xlu1 %418, %v58_v10  }
  0x9f   :  { %v59_v11 = vld [vmem:[#allocation2 + $0x8] sm:$0xff] }
  0xa0   :  { %68 = vperm.xlu1 %418, %v59_v11  }
  0xdc   :  { %v411_v55 = vpop.f32.mrb[0].mxu1 }
  0xdd   :  { %v336_v57 = vadd.f32 %v411_v55, %v253_v54  ;;  %v326_v58 = vpop.f32.mrb[1].mxu1 }
  0xde   :  { %v335_v59 = vadd.f32 %v326_v58, %v252_v56 }
  0xdf   :  { %338 = vst.msk [vmem:[#allocation7 + $0x8] sm:$0xff] %vm36_vm0, %v336_v57 }
  0xe0   :  { %337 = vst.msk [vmem:[#allocation7] sm:$0xff] %vm36_vm0, %v335_v59 }
 0x11b   :  { %v64_v15 = vpop.permute.xlu1 %63 }
 0x11c   :  { %v77_v16 = vadd.f32 %v391_v14, %v64_v15 }
 0x11e   :  { %v81_v17 = vmul.f32 0.2, %v77_v16  ;;  %vm79_vm3 = vcmp.ge.f32.partialorder %v77_v16, 0.0 }
 0x11f   :  { %v69_v18 = vpop.permute.xlu1 %68 }
 0x120   :  { %v78_v20 = vadd.f32 %v391_v14, %v69_v18  ;;  %v83_v21 = vsel %vm79_vm3, %v77_v16, %v81_v17 }
 0x121   :  { %v87_v22 = vsel %vm85_vm4, %v83_v21, -9e+15 }
 0x122   :  { %v82_v23 = vmul.f32 0.2, %v78_v20  ;;  %v92_v24 = vsel %vm91_vm2, %v87_v22, -inf  ;;  %vm80_vm5 = vcmp.ge.f32.partialorder %v78_v20, 0.0 }
 0x123   :  { %93 = vmax.xlane.f32.xlu0 %v92_v24 }
 0x124   :  { %v84_v25 = vsel %vm80_vm5, %v78_v20, %v82_v23  ;;  %v153_v20 = vld [vmem:[#allocation6 + $0x8] sm:$0xff] }
 0x125   :  { %v88_v26 = vsel %vm86_vm6, %v84_v25, -9e+15 }
 0x126   :  { %v95_v27 = vsel %vm91_vm2, %v88_v26, -inf }
 0x127   :  { %96 = vmax.xlane.f32.xlu1 %v95_v27 }
 0x1b0   :  { %v94_v30 = vpop.xlane.xlu0 %93 }
 0x1b1   :  { %v98_v31 = vmax.f32 %v89_v29, %v94_v30  ;;  %v366_v30 = vld [vmem:[#allocation7] sm:$0xff] }
 0x1b3   :  { %v100_v33 = vsub.f32 %v89_v29, %v98_v31  ;;  %149 = vst.msk [vmem:[#allocation3] sm:$0xff] %vm43_vm1, %v98_v31  ;;  %108 = vperm.xlu0 %419, %v98_v31   ;;  %v368_v31 = vmul.f32 0.9, %v366_v30 }
 0x1b4   :  { %v97_v34 = vpop.xlane.xlu1 %96 }
 0x1b5   :  { %v99_v35 = vmax.f32 %v90_v32, %v97_v34  ;;  %v102_v51 = vmul.f32 1.442695, %v100_v33  ;;  %v367_v34 = vld [vmem:[#allocation7 + $0x8] sm:$0xff] }
 0x1b6   :  { %v369_v37 = vmul.f32 0.9, %v367_v34 }
 0x1b7   :  { %v101_v36 = vsub.f32 %v90_v32, %v99_v35  ;;  %150 = vst.msk [vmem:[#allocation3 + $0x8] sm:$0xff] %vm43_vm1, %v99_v35  ;;  %113 = vperm.xlu1 %418, %v99_v35  }
 0x1b9   :  { %v104_v50 = vmul.f32 1.442695, %v101_v36 }
 0x232   :  { %v109_v38 = vpop.permute.xlu0 %108 }
 0x233   :  { %v116_v39 = vsub.f32 %v87_v22, %v109_v38  ;;  %v152_v22 = vld [vmem:[#allocation6] sm:$0xff] }
 0x235   :  { %v118_v40 = vmul.f32 1.442695, %v116_v39 }
 0x236   :  { %v114_v41 = vpop.permute.xlu1 %113 }
 0x237   :  { %420 = vpow2.f32 %v118_v40  ;;  %v117_v42 = vsub.f32 %v88_v26, %v114_v41 }
 0x239   :  { %v120_v43 = vmul.f32 1.442695, %v117_v42 }
 0x23b   :  { %422 = vpow2.f32 %v120_v43 }
 0x23c   :  { %424 = vpow2.f32 %v104_v50 }
 0x23d   :  { %426 = vpow2.f32 %v102_v51 }
 0x241   :  { %v421_v44 = vpop.eup %420 }
 0x242   :  { %404 = vmatprep.mubr.msk.f32.mxu0 %vm91_vm2, %v421_v44  ;;  %v126_v45 = vsel %vm91_vm2, %v421_v44, 0.0 }
 0x243   :  { %127 = vadd.xlane.f32.xlu0 %v126_v45 }
 0x245   :  { %v423_v47 = vpop.eup %422 }
 0x246   :  { %405 = vmatmul.mubr.msk.f32.vlgmr.msra.gmra.mrb[0].mxu0 %vm91_vm2, %v423_v47  ;;  %v129_v48 = vsel %vm91_vm2, %v423_v47, 0.0  ;;  %v425_v52 = vpop.eup %424 }
 0x247   :  { %130 = vadd.xlane.f32.xlu1 %v129_v48  ;;  %140 = vadd.xlane.f32.xlu0 %v139_v46  ;;  %v427_v53 = vpop.eup %426  ;;  %v125_v2 = vmul.f32 %v425_v52, %v123_v63 }
 0x248   :  { %v124_v61 = vmul.f32 %v427_v53, %v122_v60 }
 0x24b   :  { %143 = vadd.xlane.f32.xlu0 %v142_v49 }
 0x258   :  { %161 = vperm.xlu1 %418, %v425_v52  }
 0x261   :  { %156 = vperm.xlu0 %419, %v427_v53  }
 0x2d0   :  { %v128_v62 = vpop.xlane.xlu0 %127 }
 0x2d1   :  { %v132_v0 = vadd.f32 %v128_v62, %v124_v61 }
 0x2d3   :  { %135 = vst.msk [vmem:[#allocation4] sm:$0xff] %vm43_vm1, %v132_v0 }
 0x2d4   :  { %v131_v3 = vpop.xlane.xlu1 %130  ;;  %v141_v4 = vpop.xlane.xlu0 %140 }
 0x2d5   :  { %v133_v5 = vadd.f32 %v131_v3, %v125_v2  ;;  %v145_v6 = vadd.f32 %v141_v4, %v137_v1 }
 0x2d7   :  { %136 = vst.msk [vmem:[#allocation4 + $0x8] sm:$0xff] %vm43_vm1, %v133_v5  ;;  %147 = vst.msk [vmem:[#allocation5] sm:$0xff] %vm43_vm1, %v145_v6 }
 0x2d8   :  { %v144_v8 = vpop.xlane.xlu0 %143  ;;  %v162_v21 = vpop.permute.xlu1 %161 }
 0x2d9   :  { %v146_v9 = vadd.f32 %v144_v8, %v138_v7  ;;  %v165_v24 = vmul.f32 %v162_v21, %v153_v20 }
 0x2da   :  { %v342_v10 = vld [vmem:[#allocation4] sm:$0xff] }
 0x2db   :  { %148 = vst.msk [vmem:[#allocation5 + $0x8] sm:$0xff] %vm43_vm1, %v146_v9  ;;  %428 = vrcp.f32 %v342_v10 }
 0x2de   :  { %v343_v11 = vld [vmem:[#allocation4 + $0x8] sm:$0xff]  ;;  %v346_v12 = vld [vmem:[#allocation5] sm:$0xff] }
 0x2df   :  { %430 = vrcp.f32 %v343_v11  ;;  %v348_v13 = vmul.f32 0.1, %v346_v12 }
 0x2e0   :  { %v157_v23 = vpop.permute.xlu0 %156 }
 0x2e1   :  { %v164_v25 = vmul.f32 %v157_v23, %v152_v22 }
 0x2e2   :  { %v347_v14 = vld [vmem:[#allocation5 + $0x8] sm:$0xff] }
 0x2e3   :  { %v349_v17 = vmul.f32 0.1, %v347_v14 }
 0x2e5   :  { %v429_v15 = vpop.eup %428 }
 0x2e6   :  { %v350_v16 = vmul.f32 %v429_v15, %v348_v13 }
 0x2e8   :  { %356 = vperm.xlu1 %418, %v350_v16  }
 0x2e9   :  { %v431_v18 = vpop.eup %430 }
 0x2ea   :  { %v351_v19 = vmul.f32 %v431_v18, %v349_v17 }
 0x2ec   :  { %361 = vperm.xlu0 %419, %v351_v19  }
 0x319   :  { %v406_v26 = vpop.f32.mrb[0].mxu0 }
 0x31a   :  { %v248_v27 = vadd.f32 %v406_v26, %v165_v24  ;;  %v238_v28 = vpop.f32.mrb[1].mxu0 }
 0x31b   :  { %v247_v29 = vadd.f32 %v238_v28, %v164_v25 }
 0x31c   :  { %251 = vst.msk [vmem:[#allocation6 + $0x8] sm:$0xff] %vm36_vm0, %v248_v27 }
 0x31d   :  { %250 = vst.msk [vmem:[#allocation6] sm:$0xff] %vm36_vm0, %v247_v29 }
 0x323   :  { %v353_v38 = vld [vmem:[#allocation6 + $0x8] sm:$0xff] }
 0x324   :  { %v352_v32 = vld [vmem:[#allocation6] sm:$0xff] }
 0x367   :  { %v357_v33 = vpop.permute.xlu1 %356 }
 0x368   :  { %v364_v35 = vmul.f32 %v357_v33, %v352_v32 }
 0x36a   :  { %v370_v36 = vadd.f32 %v368_v31, %v364_v35 }
 0x36b   :  { %v362_v39 = vpop.permute.xlu0 %361 }
 0x36c   :  { %372 = vst.msk [vmem:[#allocation8] sm:$0xff] %vm36_vm0, %v370_v36  ;;  %v365_v40 = vmul.f32 %v362_v39, %v353_v38 }
 0x36e   :  { %v371_v41 = vadd.f32 %v369_v37, %v365_v40 }
 0x370   :  { %373 = vst.msk [vmem:[#allocation8 + $0x8] sm:$0xff] %vm36_vm0, %v371_v41 }
 0x371   :  { %443 = shalt.err (!%p440_p4)
}
 0x372   :  { %s444_s7 = scalar_lea.hbm %s571_s5, 256 }
 0x373   :  { %p445_p5 = scmp.ne.s32.totalorder %s571_s5, %s444_s7  ;;  %p448_p6 = scmp.lt.u32.totalorder %s444_s7, %s571_s5 }
 0x375   :  { %p450_p7 = pnand %p448_p6, %p445_p5 }
 0x377   :  { %453 = shalt.err (!%p450_p7)
}
 0x378   :  { %s460_s12 = smov 128   ;;  %s461_s13 = smov 8  }
 0x379   :  { %385 = dma.vmem_to_hbm [thread:$0]  %s380_s28, 256, %s571_s5, [#allocation9], %s460_s12, %s460_s12, %s461_s13  }
 0x37a   :  { %454 = dma.done.wait [#allocation9], 256  }
 0x37b   :  { %455 = vsyncadd [#allocation9], 4294967040 }
 0x37c   :  { %389 = vsyncpa [#allocation9], 1 }

</bundles_post_ra>
